<compile_context>
chip_gen: v7x
topology: tpu7x:2x2x1
jax: 0.10.0
libtpu: 0.0.40
codegen_flags: <defaults>
</compile_context>

<pallas_src>
import functools
import math

import jax
import jax.numpy as jnp
from jax import lax
from jax.experimental import pallas as pl
from jax.experimental.pallas import tpu as pltpu

D_MODEL = 6
NHEAD = 2
HEAD_DIM = D_MODEL // NHEAD
DFF = 16
NUM_ENC_LAYERS = 2

# Lane-aligned column groups inside the packed parameter slab (768 lanes wide).
Q_OFF, K_OFF, V_OFF = 0, 128, 256
OUT_OFF, FF1_OFF, FF2_OFF = 384, 512, 640
SLAB_LANES = 768
SLAB_ROWS = 16

_VMEM = pl.BlockSpec(memory_space=pltpu.MemorySpace.VMEM)


# ----------------------------- kernels ------------------------------------ #

def _affine_kernel(x_ref, w_ref, b_ref, o_ref):
    # y = w @ x^T + b with w in PyTorch (out=1, in=D) layout.
    # Output is (1, B*S): lane-dense store instead of a last-dim-1 tensor.
    out = lax.dot_general(w_ref[...], x_ref[...], (((1,), (1,)), ((), ())),
                          preferred_element_type=jnp.float32) + b_ref[...]
    o_ref[...] = out.astype(o_ref.dtype)


def _layer_norm(x, w, b, eps=1e-5):
    # Single-pass statistics: var = E[x^2] - E[x]^2 (biased, like PyTorch).
    mean = jnp.mean(x, axis=-1, keepdims=True)
    mean_sq = jnp.mean(x * x, axis=-1, keepdims=True)
    var = mean_sq - mean * mean
    return (x - mean) * lax.rsqrt(var + eps) * w + b


def _encoder_kernel(x_ref, slab_ref, o_ref, *,
                    batch, seq, num_layers, nhead, head_dim, dff):
    # linear4(TransformerEncoder(x)): post-norm layers, ReLU FF, no dropout.
    D = nhead * head_dim
    F = dff
    BS = batch * seq
    scale = 1.0 / math.sqrt(head_dim)
    x = x_ref[...]                                         # (BS, D) f32

    # Per-head Q/V column masks over D (scale folded into the Q mask) and the
    # block-diagonal attention bias -- all hoisted out of the layer loop.
    col = lax.broadcasted_iota(jnp.int32, (1, D), 1)
    head_q_masks, head_v_masks = [], []
    for h in range(nhead):
        in_head = (col >= h * head_dim) & (col < (h + 1) * head_dim)
        head_q_masks.append(jnp.where(in_head, scale, 0.0))
        head_v_masks.append(jnp.where(in_head, 1.0, 0.0))
    row_blk = lax.broadcasted_iota(jnp.int32, (BS, BS), 0) // seq
    col_blk = lax.broadcasted_iota(jnp.int32, (BS, BS), 1) // seq
    blk_bias = jnp.where(row_blk == col_blk, 0.0, -1e30)   # (BS, BS)

    for l in range(num_layers):                            # static unrolled
        # All slab slices start at lane offsets 0/128/256/... -> no realign.
        in_wT = slab_ref[l, 0:D, 0:3 * 128]                # (D, 384) padded QKV
        out_wT = slab_ref[l, 0:D, OUT_OFF:OUT_OFF + D]     # (D, D)
        ff1_wT = slab_ref[l, 0:D, FF1_OFF:FF1_OFF + F]     # (D, F)
        ff2_w = slab_ref[l, 0:D, FF2_OFF:FF2_OFF + F]      # (D, F) PyTorch layout
        in_b = slab_ref[l, 8:9, 0:3 * 128]                 # (1, 384) padded
        out_b = slab_ref[l, 9:10, 0:D]
        ff1_b = slab_ref[l, 10:11, 0:F]
        ff2_b = slab_ref[l, 11:12, 0:D]
        ln1_w = slab_ref[l, 12:13, 0:D]
        ln1_b = slab_ref[l, 13:14, 0:D]
        ln2_w = slab_ref[l, 14:15, 0:D]
        ln2_b = slab_ref[l, 15:16, 0:D]

        # --- fused QKV projection: one MXU op; Q/K/V land lane-aligned ---
        qkv = jnp.dot(x, in_wT, preferred_element_type=jnp.float32) + in_b
        q = qkv[:, Q_OFF:Q_OFF + D]                        # (BS, D)
        k = qkv[:, K_OFF:K_OFF + D]
        v = qkv[:, V_OFF:V_OFF + D]

        # --- block-diagonal attention: 2 MXU pushes per head per layer ---
        attn = jnp.zeros((BS, D), jnp.float32)
        for h in range(nhead):
            qh = q * head_q_masks[h]                       # scale folded in
            vh = v * head_v_masks[h]
            s = lax.dot_general(qh, k, (((1,), (1,)), ((), ())),
                                preferred_element_type=jnp.float32) + blk_bias
            s = s - jnp.max(s, axis=-1, keepdims=True)
            p = jnp.exp(s)
            p = p * pl.reciprocal(jnp.sum(p, axis=-1, keepdims=True),
                                  approx=True)
            attn = attn + jnp.dot(p, vh, preferred_element_type=jnp.float32)

        # --- output projection + residual + LayerNorm (f32) ---
        attn = jnp.dot(attn, out_wT, preferred_element_type=jnp.float32) + out_b
        x = _layer_norm(x + attn, ln1_w, ln1_b)

        # --- feed-forward: Linear(6,16) -> ReLU -> Linear(16,6) ---
        h1 = jnp.dot(x, ff1_wT, preferred_element_type=jnp.float32) + ff1_b
        h1 = jnp.maximum(h1, 0.0)
        ff = lax.dot_general(h1, ff2_w, (((1,), (1,)), ((), ())),
                             preferred_element_type=jnp.float32) + ff2_b
        x = _layer_norm(x + ff, ln2_w, ln2_b)

    # --- linear4: Linear(6,1), stored lane-dense as (1, B*S) ---
    w4 = slab_ref[num_layers, 0:1, 0:D]                    # (1, D)
    b4 = slab_ref[num_layers, 1:2, 0:1]                    # (1, 1)
    out = lax.dot_general(w4, x, (((1,), (1,)), ((), ())),
                          preferred_element_type=jnp.float32) + b4
    o_ref[...] = out.astype(o_ref.dtype)


# --------------------------- parameters ------------------------------------ #

def init_params(key):
    ks = jax.random.split(key, 14)

    def rnd(k, shape, scale=0.1):
        return scale * jax.random.normal(k, shape, jnp.float32)

    D, F, L = D_MODEL, DFF, NUM_ENC_LAYERS
    p = {}
    # linear1 = Sequential(Linear(6,10), Linear(10,1)); first layer const-init.
    p["l1_w0"] = jnp.full((10, D), 0.5, jnp.float32)       # nn.init.constant_ 0.5
    p["l1_b0"] = jnp.zeros((10,), jnp.float32)             # nn.init.constant_ 0
    p["l1_w1"] = rnd(ks[0], (1, 10))
    p["l1_b1"] = rnd(ks[1], (1,))
    # Pre-composed affine map (no nonlinearity between the two Linears).
    p["l1_w_eff"] = p["l1_w1"] @ p["l1_w0"]                               # (1, D)
    p["l1_b_eff"] = (p["l1_w1"] @ p["l1_b0"] + p["l1_b1"]).reshape(1, 1)  # (1, 1)
    # linear2[0] / linear3['Linear'] = Linear(6,1), const-init.
    p["l2_w"] = jnp.full((1, D), 0.5, jnp.float32)
    p["l2_b"] = jnp.zeros((1, 1), jnp.float32)
    p["l3_w"] = jnp.full((1, D), 0.5, jnp.float32)
    p["l3_b"] = jnp.zeros((1, 1), jnp.float32)

    # TransformerEncoderLayer params (TransformerEncoder deep-copies the layer,
    # so both layers start from identical values -> same block in the slab).
    in_wT = rnd(ks[2], (D, 3 * D))      # x @ in_wT
    in_b = rnd(ks[3], (3 * D,))
    out_wT = rnd(ks[4], (D, D))
    out_b = rnd(ks[5], (D,))
    ff1_wT = rnd(ks[6], (D, F))
    ff1_b = rnd(ks[7], (F,))
    ff2_w = rnd(ks[8], (D, F))          # PyTorch layout (d_model, dff); h1 @ ff2_w.T
    ff2_b = rnd(ks[9], (D,))
    ln1_w = jnp.ones((D,), jnp.float32)
    ln1_b = jnp.zeros((D,), jnp.float32)
    ln2_w = jnp.ones((D,), jnp.float32)
    ln2_b = jnp.zeros((D,), jnp.float32)
    p["enc_raw"] = dict(in_wT=in_wT, in_b=in_b, out_wT=out_wT, out_b=out_b,
                        ff1_wT=ff1_wT, ff1_b=ff1_b, ff2_w=ff2_w, ff2_b=ff2_b,
                        ln1_w=ln1_w, ln1_b=ln1_b, ln2_w=ln2_w, ln2_b=ln2_b)

    # linear4 = Linear(6,1).
    w4 = rnd(ks[10], (1, D))
    b4 = rnd(ks[11], (1,))
    p["l4_w"] = w4
    p["l4_b"] = b4

    # ---- one lane-aligned parameter slab for the encoder kernel ----
    # Rows 0:D  -> weights, lane groups at 0/128/256 (QKV), 384, 512, 640.
    # Rows 8:16 -> biases / LayerNorm params, one per row at lane 0.
    # Slab index L holds linear4 (row 0 = w4, row 1 = b4).
    in_w_pad = jnp.zeros((D, 3 * 128), jnp.float32)
    in_w_pad = in_w_pad.at[:, Q_OFF:Q_OFF + D].set(in_wT[:, 0:D])
    in_w_pad = in_w_pad.at[:, K_OFF:K_OFF + D].set(in_wT[:, D:2 * D])
    in_w_pad = in_w_pad.at[:, V_OFF:V_OFF + D].set(in_wT[:, 2 * D:3 * D])
    in_b_pad = jnp.zeros((3 * 128,), jnp.float32)
    in_b_pad = in_b_pad.at[Q_OFF:Q_OFF + D].set(in_b[0:D])
    in_b_pad = in_b_pad.at[K_OFF:K_OFF + D].set(in_b[D:2 * D])
    in_b_pad = in_b_pad.at[V_OFF:V_OFF + D].set(in_b[2 * D:3 * D])

    layer_blk = jnp.zeros((SLAB_ROWS, SLAB_LANES), jnp.float32)
    layer_blk = layer_blk.at[0:D, 0:3 * 128].set(in_w_pad)
    layer_blk = layer_blk.at[0:D, OUT_OFF:OUT_OFF + D].set(out_wT)
    layer_blk = layer_blk.at[0:D, FF1_OFF:FF1_OFF + F].set(ff1_wT)
    layer_blk = layer_blk.at[0:D, FF2_OFF:FF2_OFF + F].set(ff2_w)
    layer_blk = layer_blk.at[8, 0:3 * 128].set(in_b_pad)
    layer_blk = layer_blk.at[9, 0:D].set(out_b)
    layer_blk = layer_blk.at[10, 0:F].set(ff1_b)
    layer_blk = layer_blk.at[11, 0:D].set(ff2_b)
    layer_blk = layer_blk.at[12, 0:D].set(ln1_w)
    layer_blk = layer_blk.at[13, 0:D].set(ln1_b)
    layer_blk = layer_blk.at[14, 0:D].set(ln2_w)
    layer_blk = layer_blk.at[15, 0:D].set(ln2_b)

    l4_blk = jnp.zeros((SLAB_ROWS, SLAB_LANES), jnp.float32)
    l4_blk = l4_blk.at[0, 0:D].set(w4[0])
    l4_blk = l4_blk.at[1, 0].set(b4[0])

    p["enc_slab"] = jnp.stack([layer_blk] * L + [l4_blk], axis=0)  # (L+1, 16, 768)
    return p


# ----------------------------- wrapper ------------------------------------- #

def torch_model_forward(params, x, layer=1):
    B, S, D = x.shape
    BS = B * S
    xf = x.reshape(BS, D)

    if layer in (1, 2, 3):
        if layer == 1:
            w, b = params["l1_w_eff"], params["l1_b_eff"]
        elif layer == 2:
            w, b = params["l2_w"], params["l2_b"]
        else:
            w, b = params["l3_w"], params["l3_b"]
        out = pl.pallas_call(
            _affine_kernel,
            out_shape=jax.ShapeDtypeStruct((1, BS), x.dtype),   # lane-dense store
            in_specs=[_VMEM, _VMEM, _VMEM],
            out_specs=_VMEM,
        )(xf, w, b)
        return out.reshape(B, S, 1)

    elif layer == 4:
        kern = functools.partial(
            _encoder_kernel, batch=B, seq=S, num_layers=NUM_ENC_LAYERS,
            nhead=NHEAD, head_dim=HEAD_DIM, dff=DFF)
        out = pl.pallas_call(
            kern,
            out_shape=jax.ShapeDtypeStruct((1, BS), x.dtype),   # lane-dense store
            in_specs=[_VMEM, _VMEM],                            # 2 DMAs: x + slab
            out_specs=_VMEM,
        )(xf, params["enc_slab"])
        return out.reshape(B, S, 1)
    else:
        raise ValueError("layer must be in {1,2,3,4}")


# --------------------------- plain-JAX reference ---------------------------- #

def _ref_forward(params, x, layer):
    D, F = D_MODEL, DFF
    if layer == 1:
        h = x @ params["l1_w0"].T + params["l1_b0"]
        return h @ params["l1_w1"].T + params["l1_b1"]
    if layer in (2, 3):
        w = params["l2_w"] if layer == 2 else params["l3_w"]
        b = params["l2_b"] if layer == 2 else params["l3_b"]
        return x @ w.T + b
    # layer == 4
    e = params["enc_raw"]
    for _ in range(NUM_ENC_LAYERS):
        qkv = x @ e["in_wT"] + e["in_b"]
        q, k, v = qkv[..., :D], qkv[..., D:2 * D], qkv[..., 2 * D:]
        heads = []
        for h in range(NHEAD):
            sl = slice(h * HEAD_DIM, (h + 1) * HEAD_DIM)
            s = jnp.einsum('bqe,bke->bqk', q[..., sl], k[..., sl]) / math.sqrt(HEAD_DIM)
            p_ = jax.nn.softmax(s, axis=-1)
            heads.append(jnp.einsum('bqk,bke->bqe', p_, v[..., sl]))
        attn = jnp.concatenate(heads, -1) @ e["out_wT"] + e["out_b"]
        x = _layer_norm(x + attn, e["ln1_w"], e["ln1_b"])
        h1 = jnp.maximum(x @ e["ff1_wT"] + e["ff1_b"], 0.0)
        ff = h1 @ e["ff2_w"].T + e["ff2_b"]
        x = _layer_norm(x + ff, e["ln2_w"], e["ln2_b"])
    return x @ params["l4_w"].T + params["l4_b"]


# -------------------------------- main -------------------------------------- #

if __name__ == "__main__":
    key = jax.random.PRNGKey(0)
    kx, kp = jax.random.split(key)
    params = init_params(kp)

    B, S = 2, 8
    x = jax.random.normal(kx, (B, S, D_MODEL), jnp.float32)

    for layer in (1, 2, 3, 4):
        out = jax.block_until_ready(torch_model_forward(params, x, layer=layer))
        ref = _ref_forward(params, x, layer)
        assert out.shape == (B, S, 1), (layer, out.shape)
        # f32 everywhere; tolerance covers MXU default precision + approx recip.
        assert jnp.allclose(out, ref, atol=2e-2, rtol=2e-2), f"mismatch layer={layer}"

    print("KERNEL_OK")
</pallas_src>

<mosaic_0001>
module attributes {stable_mosaic.version = 11 : i64} {
  func.func @_affine_kernel(%arg0: memref<16x6xf32, #tpu.memory_space<vmem>>, %arg1: memref<1x6xf32, #tpu.memory_space<vmem>>, %arg2: memref<1x1xf32, #tpu.memory_space<vmem>>, %arg3: memref<1x16xf32, #tpu.memory_space<vmem>>) attributes {dimension_semantics = [], scalar_prefetch = 0 : i64, scratch_operands = 0 : i64, tpu.core_type = #tpu.core_type<tc>} {
    %c0 = arith.constant 0 : index
    %c0_0 = arith.constant 0 : index
    %0 = vector.load %arg1[%c0, %c0_0] : memref<1x6xf32, #tpu.memory_space<vmem>>, vector<1x6xf32>
    %c0_1 = arith.constant 0 : index
    %c0_2 = arith.constant 0 : index
    %1 = vector.load %arg0[%c0_1, %c0_2] : memref<16x6xf32, #tpu.memory_space<vmem>>, vector<16x6xf32>
    %cst = arith.constant dense<0.000000e+00> : vector<1x16xf32>
    %2 = tpu.matmul %0, %1, %cst {dimension_numbers = #tpu.dot_dimension_numbers<[1], [1], [0], [0], [0, 0, 1, 0], [], []>} : vector<1x6xf32>, vector<16x6xf32>, vector<1x16xf32> -> vector<1x16xf32>
    %c0_3 = arith.constant 0 : index
    %c0_4 = arith.constant 0 : index
    %3 = vector.load %arg2[%c0_3, %c0_4] : memref<1x1xf32, #tpu.memory_space<vmem>>, vector<1x1xf32>
    %4 = vector.broadcast %3 : vector<1x1xf32> to vector<1x16xf32>
    %5 = arith.addf %2, %4 : vector<1x16xf32>
    %c0_5 = arith.constant 0 : index
    %c0_6 = arith.constant 0 : index
    %6 = vector.load %arg3[%c0_5, %c0_6] : memref<1x16xf32, #tpu.memory_space<vmem>>, vector<1x16xf32>
    tpu.vector_store %arg3[%c0_5, %c0_6], %5 {strides = array<i32>} : memref<1x16xf32, #tpu.memory_space<vmem>>, vector<1x16xf32>,
    return
  }
}

</mosaic_0001>

<bundles_post_ra>
// kernel: tpu_custom_call.1
= control target key start
LH: loop header
LB: loop body
LE: loop exit
PB: predicated region body
PF: predicated region fallthrough
CT: control target
= control target key end

     0   :  { %s222_s0 = inlined_call_operand.vmem [shape: f32[16,6], index: 0, kind: input, shape index: {}]   ;;  %s223_s1 = inlined_call_operand.vmem [shape: f32[1,6], index: 1, kind: input, shape index: {}]   ;;  %s224_s2 = inlined_call_operand.<no memory space> [shape: f32[1,1], index: 2, kind: input, shape index: {}]   ;;  %s225_s3 = inlined_call_operand.hbm [shape: f32[1,16], index: 3, kind: output, shape index: {}]  }
   0x1   :  { %v8_v0 = vstv %s224_s2 }
   0x2   :  { %9 = vst [vmem:[#allocation2] sm:$0x1] %v8_v0 }
   0x3   :  { %v18_v1 = vld [vmem:[%s222_s0] sm:$0xff]  ;;  %v19_v2 = vld [vmem:[%s222_s0 + $0x8] sm:$0xff]  ;;  %vm30_vm0 = vcmask 48128   ;;  %v173_v3 = vmov 0.0|0.0   ;;  %vm174_vm2 = vmmov 0   ;;  %v175_v5 = vmov 0.0  }
   0x4   :  { %139 = vmatprep.subr.bf16.mxu0 %v173_v3  ;;  %v140_v4 = vpack.c.bf16 %v19_v2, %v18_v1  ;;  %vm141_vm1 = vmpackc.low %vm30_vm0, %vm30_vm0  ;;  %136 = vmatprep.mubr.msk.f32.mxu0 %vm174_vm2, %v175_v5  ;;  %v176_v7 = vmov 0  }
   0x5   :  { %148 = vset.pattern.permute.xlu0 %v176_v7 }
   0x9   :  { %v20_v6 = vld [vmem:[#allocation2] sm:$0x1] }
   0xa   :  { %10 = vsyncpa [#allocation4], 0  ;;  %142 = vmatpush3.bf16.xpose.msk.msra.mxu0 %vm141_vm1, %v140_v4  ;;  %23 = vperm.xlu0 %148, %v20_v6   ;;  %v17_v8 = vld [vmem:[%s223_s1] sm:$0x1]  ;;  %v26_v9 = vlaneseq  ;;  %s177_s0 = smov [#allocation3]   ;;  %vm110_vm3 = vcmask 122880  }
   0xb   :  { %s118_s19 = sshll.u32 %s177_s0, 4  ;;  %s119_s19 = int_to_ptr.vmem [resolvable:$true] %s118_s19 }
   0xc   :  { %v27_v10 = vshrl.u32 %v26_v9, 7  ;;  %s149_s20 = scalar_lea.vmem %s119_s19, 16  ;;  %s153_s21 = scalar_lea.vmem %s119_s19, 32 }
   0xd   :  { %p150_p0 = scmp.ne.s32.totalorder %s119_s19, %s149_s20  ;;  %p154_p1 = scmp.lt.s32.totalorder %s119_s19, %s119_s19 }
   0xe   :  { %v28_v11 = vsub.s32 0, %v27_v10  ;;  %p155_p2 = scmp.lt.s32.totalorder %s153_s21, %s149_s20 }
  0x10   :  { %p156_p3 = por %p155_p2, %p154_p1 }
  0x11   :  { %137 = vmatmul.mubr.msk.f32.vlgmr.msra.gmra.mrb[0].mxu0 %vm30_vm0, %v17_v8 }
  0x12   :  { %p157_p4 = pnand %p156_p3, %p150_p0 }
  0x89   :  { %v24_v12 = vpop.permute.xlu0 %23 }
  0x8a   :  { %v29_v13 = vrot.slane %v24_v12, %v28_v11 }
  0xe4   :  { %v106_v14 = vpop.f32.mrb[0].mxu0 }
  0xe5   :  { %v107_v15 = vadd.f32 %v106_v14, %v29_v13  ;;  %v138_v16 = vpop.f32.mrb[1].mxu0 }
  0xe7   :  { %111 = vst.msk [vmem:[#allocation3] sm:$0x1] %vm110_vm3, %v107_v15 }
  0xe8   :  { %160 = shalt.err (!%p157_p4)
}
  0xe9   :  { %s161_s23 = scalar_lea.hbm %s225_s3, 16 }
  0xea   :  { %p162_p5 = scmp.ne.s32.totalorder %s225_s3, %s161_s23  ;;  %p165_p6 = scmp.lt.u32.totalorder %s161_s23, %s225_s3 }
  0xec   :  { %p167_p7 = pnand %p165_p6, %p162_p5 }
  0xee   :  { %170 = shalt.err (!%p167_p7)
}
  0xef   :  { %121 = dma.vmem_to_hbm [thread:$0]  %s119_s19, 16, %s225_s3, [#allocation4]  }
  0xf0   :  { %171 = dma.done.wait [#allocation4], 16  }
  0xf1   :  { %172 = vsyncadd [#allocation4], 4294967280 }
  0xf2   :  { %125 = vsyncpa [#allocation4], 1 }

</bundles_post_ra>
